<compile_context>
chip_gen: v5e
topology: v5e:2x2
jax: 0.10.0
libtpu: 0.0.40
codegen_flags: <defaults>
</compile_context>

<pallas_src>
import jax
import jax.numpy as jnp
from jax.experimental import pallas as pl
from jax.experimental.pallas import tpu as pltpu

_LANES = 128                            # TPU lane width
_VMEM_STREAM_BUDGET = 8 * 1024 * 1024   # bytes for double-buffered x/out tiles
_MAX_TILE_B = 2048                      # hard cap on batch rows per grid step


def _round_up(x, m):
    return ((x + m - 1) // m) * m


# ---------------------------------------------------------------------------
# Kernel: one batch tile of  y = tanh(x @ W1 + b1) @ W2 + b2
#   * W1/b1/W2/b2 are zero-padded to 128 lanes (exact zeros => identical math)
#     and stay VMEM-resident across grid steps (constant index_map).
#   * Only x and the narrow output stream HBM<->VMEM per tile.
#   * The store writes only the real n_out output columns (narrow HBM output).
# ---------------------------------------------------------------------------
def _mlp_kernel(x_ref, w1_ref, b1_ref, w2_ref, b2_ref, o_ref):
    # fc1 on the MXU with f32 accumulation, bias + tanh in f32 (VPU/EUP).
    h = jnp.dot(x_ref[...], w1_ref[...], preferred_element_type=jnp.float32)
    h = jnp.tanh(h + b1_ref[...])                 # b1 is (1, 128), broadcasts
    # fc2: feed the MXU operands in the weight's native dtype (no per-step
    # re-cast of the resident weight block).
    y = jnp.dot(h.astype(w2_ref.dtype), w2_ref[...],
                preferred_element_type=jnp.float32)
    y = y + b2_ref[...]
    # Narrow store: only the real output columns go back to HBM.
    o_ref[...] = y[:, : o_ref.shape[-1]].astype(o_ref.dtype)


def pad_params(w1, b1, w2, b2):
    """Zero-pad fc1/fc2 params to lane-dense compute shapes.  Call ONCE at
    parameter init (hoisted out of the per-call forward path).

    w1: (F, 10), b1: (10,), w2: (10, 5), b2: (5,)   -- (in, out) layout.
    Returns (w1_p, b1_p, w2_p, b2_p, n_out).
    """
    F, H = w1.shape
    Hw, O = w2.shape
    assert Hw == H
    HP = _round_up(H, _LANES)   # 128
    OP = _round_up(O, _LANES)   # 128 (compute width only; HBM output is O)
    w1_p = jnp.zeros((F, HP), w1.dtype).at[:, :H].set(w1)
    b1_p = jnp.zeros((1, HP), jnp.float32).at[0, :H].set(b1.astype(jnp.float32))
    w2_p = jnp.zeros((HP, OP), w2.dtype).at[:H, :O].set(w2)
    b2_p = jnp.zeros((1, OP), jnp.float32).at[0, :O].set(b2.astype(jnp.float32))
    return w1_p, b1_p, w2_p, b2_p, O


def _pick_tile_b(B, F, n_out, itemsize):
    """VMEM-aware batch tile: fits double-buffered x/out tiles in the stream
    budget, multiple of 8 sublanes, and prefers >= 2 grid steps (v7x dual-TC)."""
    per_row = 2 * itemsize * (F + n_out)            # double-buffered x + out
    cap = (_VMEM_STREAM_BUDGET // per_row) // 8 * 8
    cap = max(8, min(_MAX_TILE_B, cap))
    if B <= 8 or (B < 16 and B <= cap):
        return B                # single block == full array dims (always legal)
    half = _round_up(-(-B // 2), 8)                 # aim for >= 2 tiles
    return min(cap, half)


def net_forward(x, w1_p, b1_p, w2_p, b2_p, n_out):
    """Forward pass of Net.

    x: (B, F) input batch; padded params from `pad_params`.
    Returns (B, n_out) — no wrapper-side padding or slicing passes.
    """
    B, F = x.shape
    HP = w1_p.shape[1]
    OP = w2_p.shape[1]

    tile_b = _pick_tile_b(B, F, n_out, x.dtype.itemsize)
    grid = (pl.cdiv(B, tile_b),)    # ragged last block: OOB rows are discarded

    return pl.pallas_call(
        _mlp_kernel,
        out_shape=jax.ShapeDtypeStruct((B, n_out), x.dtype),
        grid=grid,
        in_specs=[
            pl.BlockSpec((tile_b, F), lambda i: (i, 0)),   # x streams per tile
            pl.BlockSpec((F, HP),     lambda i: (0, 0)),   # weights stay resident
            pl.BlockSpec((1, HP),     lambda i: (0, 0)),
            pl.BlockSpec((HP, OP),    lambda i: (0, 0)),
            pl.BlockSpec((1, OP),     lambda i: (0, 0)),
        ],
        out_specs=pl.BlockSpec((tile_b, n_out), lambda i: (i, 0)),
        compiler_params=pltpu.CompilerParams(
            dimension_semantics=("parallel",),        # megacore-shardable batch
            vmem_limit_bytes=32 * 1024 * 1024,        # raises v5e's 16 MiB default
        ),
    )(x, w1_p, b1_p, w2_p, b2_p)


def _ref_forward(x, w1, b1, w2, b2):
    h = jnp.tanh(x @ w1 + b1)
    return h @ w2 + b2


def _init_params(key, F, H, O):
    # PyTorch-like uniform init in (in, out) layout.
    kw1, kb1, kw2, kb2 = jax.random.split(key, 4)
    bound1 = 1.0 / jnp.sqrt(jnp.float32(F))
    w1 = jax.random.uniform(kw1, (F, H), jnp.float32, -bound1, bound1)
    b1 = jax.random.uniform(kb1, (H,), jnp.float32, -bound1, bound1)
    bound2 = 1.0 / jnp.sqrt(jnp.float32(H))
    w2 = jax.random.uniform(kw2, (H, O), jnp.float32, -bound2, bound2)
    b2 = jax.random.uniform(kb2, (O,), jnp.float32, -bound2, bound2)
    return w1, b1, w2, b2


if __name__ == "__main__":
    key = jax.random.PRNGKey(0)
    H, O = 10, 5

    k1, k2, kp1, kp2 = jax.random.split(key, 4)

    # Case 1: tiny batch, single tile (grid == (1,)).
    B1, F1 = 8, 32
    x1 = jax.random.normal(k1, (B1, F1), dtype=jnp.float32)
    w1, b1, w2, b2 = _init_params(kp1, F1, H, O)
    params1 = pad_params(w1, b1, w2, b2)
    out1 = jax.block_until_ready(net_forward(x1, *params1))
    ref1 = _ref_forward(x1, w1, b1, w2, b2)
    assert out1.shape == (B1, O)
    assert jnp.allclose(out1, ref1, atol=1e-5, rtol=1e-5), "case1 mismatch"

    # Case 2: multi-tile batch with a ragged last block (B not a multiple of
    # tile_b) — exercises the pl.cdiv grid path with masked boundary DMAs.
    B2, F2 = 44, 20
    x2 = jax.random.normal(k2, (B2, F2), dtype=jnp.float32)
    w1b, b1b, w2b, b2b = _init_params(kp2, F2, H, O)
    params2 = pad_params(w1b, b1b, w2b, b2b)
    out2 = jax.block_until_ready(net_forward(x2, *params2))
    ref2 = _ref_forward(x2, w1b, b1b, w2b, b2b)
    assert out2.shape == (B2, O)
    assert jnp.allclose(out2, ref2, atol=1e-5, rtol=1e-5), "case2 mismatch"

    print("KERNEL_OK")
</pallas_src>

<mosaic_0001>
module attributes {stable_mosaic.version = 11 : i64} {
  func.func @_mlp_kernel(%arg0: i32, %arg1: memref<8x32xf32, #tpu.memory_space<vmem>>, %arg2: memref<32x128xf32, #tpu.memory_space<vmem>>, %arg3: memref<1x128xf32, #tpu.memory_space<vmem>>, %arg4: memref<128x128xf32, #tpu.memory_space<vmem>>, %arg5: memref<1x128xf32, #tpu.memory_space<vmem>>, %arg6: memref<8x5xf32, #tpu.memory_space<vmem>>) attributes {dimension_semantics = [#tpu.dimension_semantics<parallel>], iteration_bounds = array<i64: 1>, scalar_prefetch = 0 : i64, scratch_operands = 0 : i64, tpu.core_type = #tpu.core_type<tc>, window_params = [{transform_indices = @transform_0, window_bounds = array<i64: 8, 32>}, {pipeline_mode = #tpu.pipeline_mode<synchronous>, transform_indices = @transform_1, window_bounds = array<i64: 32, 128>}, {pipeline_mode = #tpu.pipeline_mode<synchronous>, transform_indices = @transform_2, window_bounds = array<i64: 1, 128>}, {pipeline_mode = #tpu.pipeline_mode<synchronous>, transform_indices = @transform_3, window_bounds = array<i64: 128, 128>}, {pipeline_mode = #tpu.pipeline_mode<synchronous>, transform_indices = @transform_4, window_bounds = array<i64: 1, 128>}, {transform_indices = @transform_5, window_bounds = array<i64: 8, 5>}]} {
    %c0 = arith.constant 0 : index
    %c0_0 = arith.constant 0 : index
    %0 = vector.load %arg1[%c0, %c0_0] : memref<8x32xf32, #tpu.memory_space<vmem>>, vector<8x32xf32>
    %c0_1 = arith.constant 0 : index
    %c0_2 = arith.constant 0 : index
    %1 = vector.load %arg2[%c0_1, %c0_2] : memref<32x128xf32, #tpu.memory_space<vmem>>, vector<32x128xf32>
    %cst = arith.constant dense<0.000000e+00> : vector<8x128xf32>
    %2 = tpu.matmul %0, %1, %cst {dimension_numbers = #tpu.dot_dimension_numbers<[1], [0], [0], [1], [0, 0, 1, 1], [], []>} : vector<8x32xf32>, vector<32x128xf32>, vector<8x128xf32> -> vector<8x128xf32>
    %c0_3 = arith.constant 0 : index
    %c0_4 = arith.constant 0 : index
    %3 = vector.load %arg3[%c0_3, %c0_4] : memref<1x128xf32, #tpu.memory_space<vmem>>, vector<1x128xf32>
    %4 = vector.broadcast %3 : vector<1x128xf32> to vector<8x128xf32>
    %5 = arith.addf %2, %4 : vector<8x128xf32>
    %6 = math.tanh %5 : vector<8x128xf32>
    %c0_5 = arith.constant 0 : index
    %c0_6 = arith.constant 0 : index
    %7 = vector.load %arg4[%c0_5, %c0_6] : memref<128x128xf32, #tpu.memory_space<vmem>>, vector<128x128xf32>
    %cst_7 = arith.constant dense<0.000000e+00> : vector<8x128xf32>
    %8 = tpu.matmul %6, %7, %cst_7 {dimension_numbers = #tpu.dot_dimension_numbers<[1], [0], [0], [1], [0, 0, 1, 1], [], []>} : vector<8x128xf32>, vector<128x128xf32>, vector<8x128xf32> -> vector<8x128xf32>
    %c0_8 = arith.constant 0 : index
    %c0_9 = arith.constant 0 : index
    %9 = vector.load %arg5[%c0_8, %c0_9] : memref<1x128xf32, #tpu.memory_space<vmem>>, vector<1x128xf32>
    %10 = vector.broadcast %9 : vector<1x128xf32> to vector<8x128xf32>
    %11 = arith.addf %8, %10 : vector<8x128xf32>
    %12 = vector.extract_strided_slice %11 {offsets = [0, 0], sizes = [8, 5], strides = [1, 1]} : vector<8x128xf32> to vector<8x5xf32>
    %c0_10 = arith.constant 0 : index
    %c0_11 = arith.constant 0 : index
    %13 = vector.load %arg6[%c0_10, %c0_11] : memref<8x5xf32, #tpu.memory_space<vmem>>, vector<8x5xf32>
    tpu.vector_store %arg6[%c0_10, %c0_11], %12 {strides = array<i32>} : memref<8x5xf32, #tpu.memory_space<vmem>>, vector<8x5xf32>,
    return
  }
  func.func @transform_0(%arg0: i32) -> (i32, i32) {
    %c0_i32 = arith.constant 0 : i32
    %c0_i32_0 = arith.constant 0 : i32
    return %arg0, %c0_i32 : i32, i32
  }
  func.func @transform_1(%arg0: i32) -> (i32, i32) {
    %c0_i32 = arith.constant 0 : i32
    %c0_i32_0 = arith.constant 0 : i32
    %c0_i32_1 = arith.constant 0 : i32
    return %c0_i32, %c0_i32_0 : i32, i32
  }
  func.func @transform_2(%arg0: i32) -> (i32, i32) {
    %c0_i32 = arith.constant 0 : i32
    %c0_i32_0 = arith.constant 0 : i32
    %c0_i32_1 = arith.constant 0 : i32
    return %c0_i32, %c0_i32_0 : i32, i32
  }
  func.func @transform_3(%arg0: i32) -> (i32, i32) {
    %c0_i32 = arith.constant 0 : i32
    %c0_i32_0 = arith.constant 0 : i32
    %c0_i32_1 = arith.constant 0 : i32
    return %c0_i32, %c0_i32_0 : i32, i32
  }
  func.func @transform_4(%arg0: i32) -> (i32, i32) {
    %c0_i32 = arith.constant 0 : i32
    %c0_i32_0 = arith.constant 0 : i32
    %c0_i32_1 = arith.constant 0 : i32
    return %c0_i32, %c0_i32_0 : i32, i32
  }
  func.func @transform_5(%arg0: i32) -> (i32, i32) {
    %c0_i32 = arith.constant 0 : i32
    %c0_i32_0 = arith.constant 0 : i32
    return %arg0, %c0_i32 : i32, i32
  }
}

</mosaic_0001>

<bundles_post_ra>
// kernel: tpu_custom_call.1
= control target key start
LH: loop header
LB: loop body
LE: loop exit
PB: predicated region body
PF: predicated region fallthrough
CT: control target
= control target key end

     0   :  { %10 = vsyncpa [#allocation3], 0  ;;  %s327_s0 = inlined_call_operand.hbm [shape: f32[8,32], index: 0, kind: input, shape index: {}]   ;;  %s328_s1 = inlined_call_operand.hbm [shape: f32[32,128], index: 1, kind: input, shape index: {}]   ;;  %s329_s2 = inlined_call_operand.vmem [shape: f32[1,128], index: 2, kind: input, shape index: {}]   ;;  %s330_s3 = inlined_call_operand.hbm [shape: f32[128,128], index: 3, kind: input, shape index: {}]   ;;  %s331_s4 = inlined_call_operand.vmem [shape: f32[1,128], index: 4, kind: input, shape index: {}]   ;;  %s332_s5 = inlined_call_operand.hbm [shape: f32[8,5], index: 5, kind: output, shape index: {}]  }
   0x1   :  { %11 = vsyncpa [#allocation6], 0  ;;  %s28_s20 = sshll.u32 %s328_s1, 4  ;;  %s29_s20 = int_to_ptr.hbm [resolvable:$true] %s28_s20 }
   0x2   :  { %12 = vsyncpa [#allocation4], 0  ;;  %s273_s21 = smov [#allocation5]   ;;  %s18_s25 = sshll.u32 %s327_s0, 4  ;;  %s19_s25 = int_to_ptr.hbm [resolvable:$true] %s18_s25 }
   0x3   :  { %s30_s22 = sshll.u32 %s273_s21, 4  ;;  %s274_s26 = smov 128   ;;  %s31_s22 = int_to_ptr.vmem [resolvable:$true] %s30_s22 }
   0x4   :  { %s275_s27 = smov 8   ;;  %s276_s28 = smov [#allocation2]  }
   0x5   :  { %36 = dma.hbm_to_vmem [thread:$0]  %s29_s20, 512, %s31_s22, [#allocation6], %s274_s26, %s274_s26, %s275_s27  }
   0x6   :  { %s20_s29 = sshll.u32 %s276_s28, 4  ;;  %s43_s7 = sshll.u32 %s330_s3, 4  ;;  %s21_s29 = int_to_ptr.vmem [resolvable:$true] %s20_s29  ;;  %s44_s7 = int_to_ptr.hbm [resolvable:$true] %s43_s7 }
   0x7   :  { %23 = dma.hbm_to_vmem [thread:$0]  %s19_s25, 128, %s21_s29, [#allocation3]  }
   0x8   :  { %s277_s1 = smov [#allocation7]  }
   0x9   :  { %s45_s8 = sshll.u32 %s277_s1, 4  ;;  %s46_s8 = int_to_ptr.vmem [resolvable:$true] %s45_s8 }
   0xa   :  { %51 = dma.hbm_to_vmem [thread:$0]  %s44_s7, 2048, %s46_s8, [#allocation6], %s274_s26, %s274_s26, %s275_s27  }
   0xb   :  { %267 = dma.done.wait [#allocation3], 128  }
   0xc   :  { %268 = vsyncadd [#allocation3], 4294967168 }
   0xd   :  { %269 = dma.done.wait [#allocation6], 2560  }
   0xe   :  { %270 = vsyncadd [#allocation6], 4294964736  ;;  %v70_v0 = vld [vmem:[#allocation5 + $0x18] sm:$0xff]  ;;  %v69_v1 = vld [vmem:[#allocation5 + $0x10] sm:$0xff]  ;;  %vm75_vm0 = vcmask 261120   ;;  %s278_s11 = smov [#allocation8]  }
   0xf   :  { %91 = vmatpush.msra.mxu0 %v70_v0  ;;  %v115_v2 = vld [vmem:[#allocation7 + $0x78] sm:$0xff]  ;;  %v68_v3 = vld [vmem:[#allocation5 + $0x8] sm:$0xff]  ;;  %v114_v4 = vld [vmem:[#allocation7 + $0x70] sm:$0xff]  ;;  %s147_s12 = sshll.u32 %s278_s11, 4  ;;  %s149_s15 = sshll.u32 %s332_s5, 4  ;;  %vm140_vm1 = vcmask 39936   ;;  %s148_s12 = int_to_ptr.vmem [resolvable:$true] %s147_s12  ;;  %s150_s15 = int_to_ptr.hbm [resolvable:$true] %s149_s15 }
  0x10   :  { %120 = vmatpush.msra.mxu1 %v115_v2  ;;  %v113_v5 = vld [vmem:[#allocation7 + $0x68] sm:$0xff]  ;;  %v67_v6 = vld [vmem:[#allocation5] sm:$0xff]  ;;  %v66_v7 = vld [vmem:[#allocation2] sm:$0xff] }
  0x11   :  { %92 = vmatpush.msra.mxu0 %v69_v1  ;;  %v112_v8 = vld [vmem:[#allocation7 + $0x60] sm:$0xff]  ;;  %v111_v9 = vld [vmem:[#allocation7 + $0x58] sm:$0xff]  ;;  %v110_v10 = vld [vmem:[#allocation7 + $0x50] sm:$0xff] }
  0x12   :  { %121 = vmatpush.msra.mxu1 %v114_v4  ;;  %v109_v11 = vld [vmem:[#allocation7 + $0x48] sm:$0xff]  ;;  %v108_v12 = vld [vmem:[#allocation7 + $0x40] sm:$0xff]  ;;  %v107_v13 = vld [vmem:[#allocation7 + $0x38] sm:$0xff] }
  0x13   :  { %93 = vmatpush.msra.mxu0 %v68_v3  ;;  %v106_v14 = vld [vmem:[#allocation7 + $0x30] sm:$0xff]  ;;  %v105_v15 = vld [vmem:[#allocation7 + $0x28] sm:$0xff]  ;;  %v104_v16 = vld [vmem:[#allocation7 + $0x20] sm:$0xff] }
  0x14   :  { %122 = vmatpush.msra.mxu1 %v113_v5  ;;  %v103_v17 = vld [vmem:[#allocation7 + $0x18] sm:$0xff]  ;;  %v102_v18 = vld [vmem:[#allocation7 + $0x10] sm:$0xff]  ;;  %v101_v19 = vld [vmem:[#allocation7 + $0x8] sm:$0xff] }
  0x15   :  { %94 = vmatpush.msra.mxu0 %v67_v6  ;;  %v100_v20 = vld [vmem:[#allocation7] sm:$0xff]  ;;  %v167_v21 = vld [vmem:[%s329_s2] ss:$0 sm:$0xff] }
  0x16   :  { %160 = vmatmul.msk.f32.vlgmr.msra.gmra.mxu0 %vm75_vm0, %v66_v7  ;;  %123 = vmatpush.msra.mxu1 %v112_v8  ;;  %v168_v25 = vld [vmem:[%s331_s4] ss:$0 sm:$0xff] }
  0x18   :  { %124 = vmatpush.msra.mxu1 %v111_v9 }
  0x1a   :  { %125 = vmatpush.msra.mxu1 %v110_v10 }
  0x1c   :  { %126 = vmatpush.msra.mxu1 %v109_v11 }
  0x1e   :  { %127 = vmatpush.msra.mxu1 %v108_v12 }
  0x20   :  { %128 = vmatpush.msra.mxu1 %v107_v13 }
  0x22   :  { %129 = vmatpush.msra.mxu1 %v106_v14 }
  0x24   :  { %130 = vmatpush.msra.mxu1 %v105_v15 }
  0x26   :  { %131 = vmatpush.msra.mxu1 %v104_v16 }
  0x28   :  { %132 = vmatpush.msra.mxu1 %v103_v17 }
  0x2a   :  { %133 = vmatpush.msra.mxu1 %v102_v18 }
  0x2c   :  { %134 = vmatpush.msra.mxu1 %v101_v19 }
  0x2e   :  { %135 = vmatpush.msra.mxu1 %v100_v20 }
  0x93   :  { %v96_v22 = vpop.f32.mrf.mxu0 }
  0x94   :  { %v97_v23 = vadd.f32 %v167_v21, %v96_v22 }
  0x96   :  { %169 = vtanh.f32 %v97_v23 }
  0x9c   :  { %v170_v24 = vpop.eup %169 }
  0x9d   :  { %136 = vmatmul.f32.vlgmr.msra.gmra.mxu1 %v170_v24 }
 0x11a   :  { %v137_v26 = vpop.f32.mrf.mxu1 }
 0x11b   :  { %v138_v27 = vadd.f32 %v168_v25, %v137_v26 }
 0x11d   :  { %141 = vst.msk [vmem:[#allocation8] sm:$0xff] %vm140_vm1, %v138_v27 }
 0x11e   :  { %152 = dma.vmem_to_hbm [thread:$0]  %s148_s12, 128, %s150_s15, [#allocation4]  }
 0x11f   :  { %271 = dma.done.wait [#allocation4], 128  }
 0x120   :  { %272 = vsyncadd [#allocation4], 4294967168 }
 0x121   :  { %157 = vsyncpa [#allocation3], 1 }
 0x122   :  { %158 = vsyncpa [#allocation6], 1 }
 0x123   :  { %159 = vsyncpa [#allocation4], 1 }

</bundles_post_ra>
